<compile_context>
chip_gen: v7x
topology: tpu7x:2x2x1
jax: 0.10.0
libtpu: 0.0.40
codegen_flags: <defaults>
</compile_context>

<pallas_src>
import math
import functools

import jax
import jax.numpy as jnp
from jax.experimental import pallas as pl
from jax.experimental.pallas import tpu as pltpu


# ----------------------------- Pallas kernels -------------------------------

def _gelu_tanh(x):
    # tanh-approx GELU (matches codertimo BERT's GELU module); tanh lands on EUP.
    return 0.5 * x * (1.0 + jnp.tanh(0.7978845608028654 * (x + 0.044715 * x * x * x)))


def _layernorm_f32(x, gamma, beta, eps):
    mean = jnp.mean(x, axis=-1, keepdims=True)
    var = jnp.mean((x - mean) ** 2, axis=-1, keepdims=True)
    return (x - mean) * jax.lax.rsqrt(var + eps) * gamma + beta


def _attn_sublayer_kernel(x_ref, kv_ref, ln_g_ref, ln_b_ref,
                          wqkv_ref, bqkv_ref, wo_ref, bo_ref, o_ref,
                          *, n_heads, d_head, eps):
    """One batch element per grid step: LN1 + QKV + MHA + O-proj + residual."""
    x = x_ref[0].astype(jnp.float32)                                   # (S, H)
    H = n_heads * d_head

    # --- pre-norm LayerNorm (f32 elementwise) ---
    h = _layernorm_f32(x, ln_g_ref[...], ln_b_ref[...], eps)

    # --- fused QKV projection: one wide MXU matmul, bf16 operands / f32 acc ---
    qkv = jnp.dot(h.astype(jnp.bfloat16), wqkv_ref[...],
                  preferred_element_type=jnp.float32) + bqkv_ref[...]  # (S, 3H)
    q, k, v = qkv[:, :H], qkv[:, H:2 * H], qkv[:, 2 * H:]

    key_valid = kv_ref[0]                                              # (1, S) in {0,1}
    scale = 1.0 / math.sqrt(d_head)

    # --- per-head scaled dot-product attention, heads unrolled in-kernel ---
    head_outs = []
    for hd in range(n_heads):
        sl = slice(hd * d_head, (hd + 1) * d_head)
        qh = q[:, sl].astype(jnp.bfloat16)
        kh = k[:, sl].astype(jnp.bfloat16)
        vh = v[:, sl].astype(jnp.bfloat16)
        # scores = (q @ k^T) * scale, masked_fill(mask == 0, -1e9), softmax
        s = jax.lax.dot_general(qh, kh, (((1,), (1,)), ((), ())),
                                preferred_element_type=jnp.float32) * scale   # (S, S)
        s = jnp.where(key_valid > 0.5, s, -1e9)        # broadcast key-padding mask
        m = jnp.max(s, axis=-1, keepdims=True)
        p = jnp.exp(s - m)
        p = p * pl.reciprocal(jnp.sum(p, axis=-1, keepdims=True), approx=True)
        head_outs.append(jnp.dot(p.astype(jnp.bfloat16), vh,
                                 preferred_element_type=jnp.float32))  # (S, d_head)
    attn = jnp.concatenate(head_outs, axis=-1)                          # (S, H)

    # --- output projection + fused residual add ---
    y = jnp.dot(attn.astype(jnp.bfloat16), wo_ref[...],
                preferred_element_type=jnp.float32) + bo_ref[...]
    o_ref[0] = (x + y).astype(o_ref.dtype)


def attention_sublayer(x, key_valid, lp, *, n_heads, eps=1e-6):
    """x: (B, S, H) f32; key_valid: (B, 1, S) f32 -> (B, S, H)."""
    B, S, H = x.shape
    d_head = H // n_heads
    wqkv = jnp.concatenate(
        [lp["q"]["w"], lp["k"]["w"], lp["v"]["w"]], axis=1).astype(jnp.bfloat16)
    bqkv = jnp.concatenate(
        [lp["q"]["b"], lp["k"]["b"], lp["v"]["b"]]).reshape(1, 3 * H)
    wo = lp["o"]["w"].astype(jnp.bfloat16)
    bo = lp["o"]["b"].reshape(1, H)

    full2d = lambda shape: pl.BlockSpec(shape, lambda b: (0, 0))
    return pl.pallas_call(
        functools.partial(_attn_sublayer_kernel,
                          n_heads=n_heads, d_head=d_head, eps=eps),
        out_shape=jax.ShapeDtypeStruct((B, S, H), jnp.float32),
        grid=(B,),
        in_specs=[
            pl.BlockSpec((1, S, H), lambda b: (b, 0, 0)),   # x (per-batch block)
            pl.BlockSpec((1, 1, S), lambda b: (b, 0, 0)),   # key-valid vector
            full2d((1, H)), full2d((1, H)),                 # LN1 gamma/beta
            full2d((H, 3 * H)), full2d((1, 3 * H)),         # fused Wqkv, bqkv
            full2d((H, H)), full2d((1, H)),                 # Wo, bo
        ],
        out_specs=pl.BlockSpec((1, S, H), lambda b: (b, 0, 0)),
        compiler_params=pltpu.CompilerParams(dimension_semantics=("parallel",)),
    )(x, key_valid,
      lp["ln1_g"].reshape(1, H), lp["ln1_b"].reshape(1, H),
      wqkv, bqkv, wo, bo)


def _ffn_sublayer_kernel(x_ref, ln_g_ref, ln_b_ref,
                         w1_ref, b1_ref, w2_ref, b2_ref, o_ref, *, eps):
    """LN2 -> ff1 -> tanh-GELU -> ff2 -> residual add for one M tile."""
    x = x_ref[...].astype(jnp.float32)                                  # (tm, H)
    h = _layernorm_f32(x, ln_g_ref[...], ln_b_ref[...], eps)
    h = jnp.dot(h.astype(jnp.bfloat16), w1_ref[...],
                preferred_element_type=jnp.float32) + b1_ref[...]       # (tm, 4H)
    h = _gelu_tanh(h)
    y = jnp.dot(h.astype(jnp.bfloat16), w2_ref[...],
                preferred_element_type=jnp.float32) + b2_ref[...]       # (tm, H)
    o_ref[...] = (x + y).astype(o_ref.dtype)


def ffn_sublayer(x2d, lp, *, tile_m, eps=1e-6):
    """x2d: (M, H) f32 -> (M, H) with residual applied."""
    M, H = x2d.shape
    F = lp["ff1"]["w"].shape[1]
    wide = lambda shape: pl.BlockSpec(shape, lambda i: (0, 0))
    return pl.pallas_call(
        functools.partial(_ffn_sublayer_kernel, eps=eps),
        out_shape=jax.ShapeDtypeStruct((M, H), jnp.float32),
        grid=(M // tile_m,),
        in_specs=[
            pl.BlockSpec((tile_m, H), lambda i: (i, 0)),    # x tile (pipelined)
            wide((1, H)), wide((1, H)),                     # LN2 gamma/beta
            wide((H, F)), wide((1, F)),                     # ff1
            wide((F, H)), wide((1, H)),                     # ff2
        ],
        out_specs=pl.BlockSpec((tile_m, H), lambda i: (i, 0)),
        compiler_params=pltpu.CompilerParams(dimension_semantics=("parallel",)),
    )(x2d,
      lp["ln2_g"].reshape(1, H), lp["ln2_b"].reshape(1, H),
      lp["ff1"]["w"].astype(jnp.bfloat16), lp["ff1"]["b"].reshape(1, F),
      lp["ff2"]["w"].astype(jnp.bfloat16), lp["ff2"]["b"].reshape(1, H))


def _head_kernel(x_ref, w_ref, b_ref, o_ref):
    y = jnp.dot(x_ref[...].astype(jnp.bfloat16), w_ref[...],
                preferred_element_type=jnp.float32) + b_ref[...]
    o_ref[...] = y.astype(o_ref.dtype)


def lm_head(x2d, w, b, *, tile_m):
    """Lane-dense LM head: pad output width to a multiple of 128, slice outside."""
    M, H = x2d.shape
    N = w.shape[1]
    Np = ((N + 127) // 128) * 128
    w_pad = jnp.zeros((H, Np), jnp.bfloat16).at[:, :N].set(w.astype(jnp.bfloat16))
    b_pad = jnp.zeros((1, Np), jnp.float32).at[:, :N].set(b)
    out = pl.pallas_call(
        _head_kernel,
        out_shape=jax.ShapeDtypeStruct((M, Np), jnp.float32),
        grid=(M // tile_m,),
        in_specs=[pl.BlockSpec((tile_m, H), lambda i: (i, 0)),
                  pl.BlockSpec((H, Np), lambda i: (0, 0)),
                  pl.BlockSpec((1, Np), lambda i: (0, 0))],
        out_specs=pl.BlockSpec((tile_m, Np), lambda i: (i, 0)),
        compiler_params=pltpu.CompilerParams(dimension_semantics=("parallel",)),
    )(x2d, w_pad, b_pad)
    return out[:, :N]


# ------------------------------ Model wrapper --------------------------------

def _choose_tile_m(M, cap=256):
    """Largest M-tile (multiple of 8, dividing M, <= cap) that yields >= 2 grid steps."""
    if M % 8 != 0:
        return M
    t = min(cap, M)
    t -= t % 8
    while t > 8 and (M % t != 0 or M // t < 2):
        t -= 8
    if t < 8 or M % t != 0:
        return M
    return t


def _uniform(key, shape, bound):
    return jax.random.uniform(key, shape, jnp.float32, -bound, bound)


def init_params(key, vocab_size, hidden, n_layers, attn_heads):
    keys = iter(jax.random.split(key, 8 + n_layers * 32))
    params = {}
    params["tok_emb"] = jax.random.normal(
        next(keys), (vocab_size, hidden), jnp.float32) * 0.02

    def lin(fan_in, fan_out):
        b = 1.0 / math.sqrt(fan_in)
        return {"w": _uniform(next(keys), (fan_in, fan_out), b),
                "b": _uniform(next(keys), (fan_out,), b)}

    layers = []
    ff = hidden * 4
    for _ in range(n_layers):
        layers.append({
            "ln1_g": jnp.ones((hidden,), jnp.float32),
            "ln1_b": jnp.zeros((hidden,), jnp.float32),
            "q": lin(hidden, hidden), "k": lin(hidden, hidden),
            "v": lin(hidden, hidden), "o": lin(hidden, hidden),
            "ln2_g": jnp.ones((hidden,), jnp.float32),
            "ln2_b": jnp.zeros((hidden,), jnp.float32),
            "ff1": lin(hidden, ff), "ff2": lin(ff, hidden),
        })
    params["layers"] = layers
    params["head"] = lin(hidden, vocab_size - 1)
    return params


def sinusoidal_positional(max_len, hidden):
    pos = jnp.arange(max_len, dtype=jnp.float32)[:, None]
    div = jnp.exp(jnp.arange(0, hidden, 2, dtype=jnp.float32)
                  * (-math.log(10000.0) / hidden))
    pe = jnp.zeros((max_len, hidden), jnp.float32)
    pe = pe.at[:, 0::2].set(jnp.sin(pos * div))
    pe = pe.at[:, 1::2].set(jnp.cos(pos * div))
    return pe


def people_model_forward(params, input_ids, *, hidden, attn_heads, vocab_size):
    B, S = input_ids.shape
    H = hidden
    mask_token = vocab_size - 1
    # key-padding mask as a compact (B, 1, S) key-valid vector; broadcast in-kernel
    key_valid = (input_ids != mask_token).astype(jnp.float32).reshape(B, 1, S)

    # embedding (token gather stays in XLA + sinusoidal positional)
    x = jnp.take(params["tok_emb"], input_ids, axis=0)                 # (B, S, H)
    x = x + sinusoidal_positional(S, H)[None, :, :]

    M = B * S
    tile_m = _choose_tile_m(M)

    for lp in params["layers"]:
        # --- attention sublayer: LN1 + QKV + MHA + O-proj + residual (fused) ---
        x = attention_sublayer(x, key_valid, lp, n_heads=attn_heads)
        # --- feed-forward sublayer: LN2 + ff1 + GELU + ff2 + residual (fused) ---
        x = ffn_sublayer(x.reshape(M, H), lp, tile_m=tile_m).reshape(B, S, H)

    # MaskedLanguageModel head: Linear(hidden, vocab_size - 1); LogSoftmax unused
    out = lm_head(x.reshape(M, H), params["head"]["w"], params["head"]["b"],
                  tile_m=tile_m)
    return out.reshape(B, S, vocab_size - 1)


# ----------------------------------- main ------------------------------------

if __name__ == "__main__":
    # small shapes consistent with the module
    VOCAB = 16
    HIDDEN = 32
    N_LAYERS = 2
    HEADS = 4
    BATCH = 2
    SEQ = 8

    root = jax.random.PRNGKey(0)
    k_in, k_param = jax.random.split(root)
    input_ids = jax.random.randint(k_in, (BATCH, SEQ), 0, VOCAB, dtype=jnp.int32)
    params = init_params(k_param, VOCAB, HIDDEN, N_LAYERS, HEADS)

    fwd = jax.jit(functools.partial(people_model_forward,
                                    hidden=HIDDEN, attn_heads=HEADS,
                                    vocab_size=VOCAB))
    out = fwd(params, input_ids)
    jax.block_until_ready(out)
    assert out.shape == (BATCH, SEQ, VOCAB - 1)
    assert bool(jnp.all(jnp.isfinite(out)))
    print("KERNEL_OK")
</pallas_src>

<mosaic_0001>
module attributes {stable_mosaic.version = 11 : i64} {
  func.func @_ffn_sublayer_kernel(%arg0: i32, %arg1: memref<8x32xf32, #tpu.memory_space<vmem>>, %arg2: memref<1x32xf32, #tpu.memory_space<vmem>>, %arg3: memref<1x32xf32, #tpu.memory_space<vmem>>, %arg4: memref<32x128xbf16, #tpu.memory_space<vmem>>, %arg5: memref<1x128xf32, #tpu.memory_space<vmem>>, %arg6: memref<128x32xbf16, #tpu.memory_space<vmem>>, %arg7: memref<1x32xf32, #tpu.memory_space<vmem>>, %arg8: memref<8x32xf32, #tpu.memory_space<vmem>>) attributes {dimension_semantics = [#tpu.dimension_semantics<parallel>], iteration_bounds = array<i64: 2>, scalar_prefetch = 0 : i64, scratch_operands = 0 : i64, tpu.core_type = #tpu.core_type<tc>, window_params = [{transform_indices = @transform_0, window_bounds = array<i64: 8, 32>}, {pipeline_mode = #tpu.pipeline_mode<synchronous>, transform_indices = @transform_1, window_bounds = array<i64: 1, 32>}, {pipeline_mode = #tpu.pipeline_mode<synchronous>, transform_indices = @transform_2, window_bounds = array<i64: 1, 32>}, {pipeline_mode = #tpu.pipeline_mode<synchronous>, transform_indices = @transform_3, window_bounds = array<i64: 32, 128>}, {pipeline_mode = #tpu.pipeline_mode<synchronous>, transform_indices = @transform_4, window_bounds = array<i64: 1, 128>}, {pipeline_mode = #tpu.pipeline_mode<synchronous>, transform_indices = @transform_5, window_bounds = array<i64: 128, 32>}, {pipeline_mode = #tpu.pipeline_mode<synchronous>, transform_indices = @transform_6, window_bounds = array<i64: 1, 32>}, {transform_indices = @transform_7, window_bounds = array<i64: 8, 32>}]} {
    %c0 = arith.constant 0 : index
    %c0_0 = arith.constant 0 : index
    %0 = vector.load %arg1[%c0, %c0_0] : memref<8x32xf32, #tpu.memory_space<vmem>>, vector<8x32xf32>
    %c0_1 = arith.constant 0 : index
    %c0_2 = arith.constant 0 : index
    %1 = vector.load %arg2[%c0_1, %c0_2] : memref<1x32xf32, #tpu.memory_space<vmem>>, vector<1x32xf32>
    %c0_3 = arith.constant 0 : index
    %c0_4 = arith.constant 0 : index
    %2 = vector.load %arg3[%c0_3, %c0_4] : memref<1x32xf32, #tpu.memory_space<vmem>>, vector<1x32xf32>
    %cst = arith.constant dense<0.000000e+00> : vector<8xf32>
    %3 = vector.multi_reduction <add>, %0, %cst [1] : vector<8x32xf32> to vector<8xf32>
    %4 = vector.shape_cast %3 : vector<8xf32> to vector<8x1xf32>
    %cst_5 = arith.constant 3.200000e+01 : f32
    %5 = vector.broadcast %cst_5 : f32 to vector<8x1xf32>
    %6 = arith.divf %4, %5 : vector<8x1xf32>
    %7 = vector.broadcast %6 : vector<8x1xf32> to vector<8x32xf32>
    %8 = arith.subf %0, %7 : vector<8x32xf32>
    %9 = arith.mulf %8, %8 : vector<8x32xf32>
    %cst_6 = arith.constant dense<0.000000e+00> : vector<8xf32>
    %10 = vector.multi_reduction <add>, %9, %cst_6 [1] : vector<8x32xf32> to vector<8xf32>
    %11 = vector.shape_cast %10 : vector<8xf32> to vector<8x1xf32>
    %cst_7 = arith.constant 3.200000e+01 : f32
    %12 = vector.broadcast %cst_7 : f32 to vector<8x1xf32>
    %13 = arith.divf %11, %12 : vector<8x1xf32>
    %14 = vector.broadcast %6 : vector<8x1xf32> to vector<8x32xf32>
    %15 = arith.subf %0, %14 : vector<8x32xf32>
    %cst_8 = arith.constant 9.99999997E-7 : f32
    %16 = vector.broadcast %cst_8 : f32 to vector<8x1xf32>
    %17 = arith.addf %13, %16 : vector<8x1xf32>
    %18 = math.rsqrt %17 : vector<8x1xf32>
    %19 = vector.broadcast %18 : vector<8x1xf32> to vector<8x32xf32>
    %20 = arith.mulf %15, %19 : vector<8x32xf32>
    %21 = vector.broadcast %1 : vector<1x32xf32> to vector<8x32xf32>
    %22 = arith.mulf %20, %21 : vector<8x32xf32>
    %23 = vector.broadcast %2 : vector<1x32xf32> to vector<8x32xf32>
    %24 = arith.addf %22, %23 : vector<8x32xf32>
    %25 = arith.truncf %24 : vector<8x32xf32> to vector<8x32xbf16>
    %c0_9 = arith.constant 0 : index
    %c0_10 = arith.constant 0 : index
    %26 = vector.load %arg4[%c0_9, %c0_10] : memref<32x128xbf16, #tpu.memory_space<vmem>>, vector<32x128xbf16>
    %cst_11 = arith.constant dense<0.000000e+00> : vector<8x128xf32>
    %27 = tpu.matmul %25, %26, %cst_11 {dimension_numbers = #tpu.dot_dimension_numbers<[1], [0], [0], [1], [0, 0, 1, 1], [], []>} : vector<8x32xbf16>, vector<32x128xbf16>, vector<8x128xf32> -> vector<8x128xf32>
    %c0_12 = arith.constant 0 : index
    %c0_13 = arith.constant 0 : index
    %28 = vector.load %arg5[%c0_12, %c0_13] : memref<1x128xf32, #tpu.memory_space<vmem>>, vector<1x128xf32>
    %29 = vector.broadcast %28 : vector<1x128xf32> to vector<8x128xf32>
    %30 = arith.addf %27, %29 : vector<8x128xf32>
    %cst_14 = arith.constant 5.000000e-01 : f32
    %31 = vector.broadcast %cst_14 : f32 to vector<8x128xf32>
    %32 = arith.mulf %31, %30 : vector<8x128xf32>
    %cst_15 = arith.constant 4.471500e-02 : f32
    %33 = vector.broadcast %cst_15 : f32 to vector<8x128xf32>
    %34 = arith.mulf %33, %30 : vector<8x128xf32>
    %35 = arith.mulf %34, %30 : vector<8x128xf32>
    %36 = arith.mulf %35, %30 : vector<8x128xf32>
    %37 = arith.addf %30, %36 : vector<8x128xf32>
    %cst_16 = arith.constant 0.797884583 : f32
    %38 = vector.broadcast %cst_16 : f32 to vector<8x128xf32>
    %39 = arith.mulf %38, %37 : vector<8x128xf32>
    %40 = math.tanh %39 : vector<8x128xf32>
    %cst_17 = arith.constant 1.000000e+00 : f32
    %41 = vector.broadcast %cst_17 : f32 to vector<8x128xf32>
    %42 = arith.addf %41, %40 : vector<8x128xf32>
    %43 = arith.mulf %32, %42 : vector<8x128xf32>
    %44 = arith.truncf %43 : vector<8x128xf32> to vector<8x128xbf16>
    %c0_18 = arith.constant 0 : index
    %c0_19 = arith.constant 0 : index
    %45 = vector.load %arg6[%c0_18, %c0_19] : memref<128x32xbf16, #tpu.memory_space<vmem>>, vector<128x32xbf16>
    %cst_20 = arith.constant dense<0.000000e+00> : vector<8x32xf32>
    %46 = tpu.matmul %44, %45, %cst_20 {dimension_numbers = #tpu.dot_dimension_numbers<[1], [0], [0], [1], [0, 0, 1, 1], [], []>} : vector<8x128xbf16>, vector<128x32xbf16>, vector<8x32xf32> -> vector<8x32xf32>
    %c0_21 = arith.constant 0 : index
    %c0_22 = arith.constant 0 : index
    %47 = vector.load %arg7[%c0_21, %c0_22] : memref<1x32xf32, #tpu.memory_space<vmem>>, vector<1x32xf32>
    %48 = vector.broadcast %47 : vector<1x32xf32> to vector<8x32xf32>
    %49 = arith.addf %46, %48 : vector<8x32xf32>
    %50 = arith.addf %0, %49 : vector<8x32xf32>
    %c0_23 = arith.constant 0 : index
    %c0_24 = arith.constant 0 : index
    %51 = vector.load %arg8[%c0_23, %c0_24] : memref<8x32xf32, #tpu.memory_space<vmem>>, vector<8x32xf32>
    tpu.vector_store %arg8[%c0_23, %c0_24], %50 {strides = array<i32>} : memref<8x32xf32, #tpu.memory_space<vmem>>, vector<8x32xf32>,
    return
  }
  func.func @transform_0(%arg0: i32) -> (i32, i32) {
    %c0_i32 = arith.constant 0 : i32
    %c0_i32_0 = arith.constant 0 : i32
    return %arg0, %c0_i32 : i32, i32
  }
  func.func @transform_1(%arg0: i32) -> (i32, i32) {
    %c0_i32 = arith.constant 0 : i32
    %c0_i32_0 = arith.constant 0 : i32
    %c0_i32_1 = arith.constant 0 : i32
    return %c0_i32, %c0_i32_0 : i32, i32
  }
  func.func @transform_2(%arg0: i32) -> (i32, i32) {
    %c0_i32 = arith.constant 0 : i32
    %c0_i32_0 = arith.constant 0 : i32
    %c0_i32_1 = arith.constant 0 : i32
    return %c0_i32, %c0_i32_0 : i32, i32
  }
  func.func @transform_3(%arg0: i32) -> (i32, i32) {
    %c0_i32 = arith.constant 0 : i32
    %c0_i32_0 = arith.constant 0 : i32
    %c0_i32_1 = arith.constant 0 : i32
    return %c0_i32, %c0_i32_0 : i32, i32
  }
  func.func @transform_4(%arg0: i32) -> (i32, i32) {
    %c0_i32 = arith.constant 0 : i32
    %c0_i32_0 = arith.constant 0 : i32
    %c0_i32_1 = arith.constant 0 : i32
    return %c0_i32, %c0_i32_0 : i32, i32
  }
  func.func @transform_5(%arg0: i32) -> (i32, i32) {
    %c0_i32 = arith.constant 0 : i32
    %c0_i32_0 = arith.constant 0 : i32
    %c0_i32_1 = arith.constant 0 : i32
    return %c0_i32, %c0_i32_0 : i32, i32
  }
  func.func @transform_6(%arg0: i32) -> (i32, i32) {
    %c0_i32 = arith.constant 0 : i32
    %c0_i32_0 = arith.constant 0 : i32
    %c0_i32_1 = arith.constant 0 : i32
    return %c0_i32, %c0_i32_0 : i32, i32
  }
  func.func @transform_7(%arg0: i32) -> (i32, i32) {
    %c0_i32 = arith.constant 0 : i32
    %c0_i32_0 = arith.constant 0 : i32
    return %arg0, %c0_i32 : i32, i32
  }
}

module attributes {stable_mosaic.version = 11 : i64} {
  func.func @_attn_sublayer_kernel(%arg0: i32, %arg1: memref<1x8x32xf32, #tpu.memory_space<vmem>>, %arg2: memref<1x1x8xf32, #tpu.memory_space<vmem>>, %arg3: memref<1x32xf32, #tpu.memory_space<vmem>>, %arg4: memref<1x32xf32, #tpu.memory_space<vmem>>, %arg5: memref<32x96xbf16, #tpu.memory_space<vmem>>, %arg6: memref<1x96xf32, #tpu.memory_space<vmem>>, %arg7: memref<32x32xbf16, #tpu.memory_space<vmem>>, %arg8: memref<1x32xf32, #tpu.memory_space<vmem>>, %arg9: memref<1x8x32xf32, #tpu.memory_space<vmem>>) attributes {dimension_semantics = [#tpu.dimension_semantics<parallel>], iteration_bounds = array<i64: 2>, scalar_prefetch = 0 : i64, scratch_operands = 0 : i64, tpu.core_type = #tpu.core_type<tc>, window_params = [{transform_indices = @transform_0, window_bounds = array<i64: 1, 8, 32>}, {transform_indices = @transform_1, window_bounds = array<i64: 1, 1, 8>}, {pipeline_mode = #tpu.pipeline_mode<synchronous>, transform_indices = @transform_2, window_bounds = array<i64: 1, 32>}, {pipeline_mode = #tpu.pipeline_mode<synchronous>, transform_indices = @transform_3, window_bounds = array<i64: 1, 32>}, {pipeline_mode = #tpu.pipeline_mode<synchronous>, transform_indices = @transform_4, window_bounds = array<i64: 32, 96>}, {pipeline_mode = #tpu.pipeline_mode<synchronous>, transform_indices = @transform_5, window_bounds = array<i64: 1, 96>}, {pipeline_mode = #tpu.pipeline_mode<synchronous>, transform_indices = @transform_6, window_bounds = array<i64: 32, 32>}, {pipeline_mode = #tpu.pipeline_mode<synchronous>, transform_indices = @transform_7, window_bounds = array<i64: 1, 32>}, {transform_indices = @transform_8, window_bounds = array<i64: 1, 8, 32>}]} {
    %c0 = arith.constant 0 : index
    %c0_0 = arith.constant 0 : index
    %c0_1 = arith.constant 0 : index
    %0 = vector.load %arg1[%c0, %c0_0, %c0_1] : memref<1x8x32xf32, #tpu.memory_space<vmem>>, vector<1x8x32xf32>
    %1 = vector.shape_cast %0 : vector<1x8x32xf32> to vector<8x32xf32>
    %c0_2 = arith.constant 0 : index
    %c0_3 = arith.constant 0 : index
    %2 = vector.load %arg3[%c0_2, %c0_3] : memref<1x32xf32, #tpu.memory_space<vmem>>, vector<1x32xf32>
    %c0_4 = arith.constant 0 : index
    %c0_5 = arith.constant 0 : index
    %3 = vector.load %arg4[%c0_4, %c0_5] : memref<1x32xf32, #tpu.memory_space<vmem>>, vector<1x32xf32>
    %cst = arith.constant dense<0.000000e+00> : vector<8xf32>
    %4 = vector.multi_reduction <add>, %1, %cst [1] : vector<8x32xf32> to vector<8xf32>
    %5 = vector.shape_cast %4 : vector<8xf32> to vector<8x1xf32>
    %cst_6 = arith.constant 3.200000e+01 : f32
    %6 = vector.broadcast %cst_6 : f32 to vector<8x1xf32>
    %7 = arith.divf %5, %6 : vector<8x1xf32>
    %8 = vector.broadcast %7 : vector<8x1xf32> to vector<8x32xf32>
    %9 = arith.subf %1, %8 : vector<8x32xf32>
    %10 = arith.mulf %9, %9 : vector<8x32xf32>
    %cst_7 = arith.constant dense<0.000000e+00> : vector<8xf32>
    %11 = vector.multi_reduction <add>, %10, %cst_7 [1] : vector<8x32xf32> to vector<8xf32>
    %12 = vector.shape_cast %11 : vector<8xf32> to vector<8x1xf32>
    %cst_8 = arith.constant 3.200000e+01 : f32
    %13 = vector.broadcast %cst_8 : f32 to vector<8x1xf32>
    %14 = arith.divf %12, %13 : vector<8x1xf32>
    %15 = vector.broadcast %7 : vector<8x1xf32> to vector<8x32xf32>
    %16 = arith.subf %1, %15 : vector<8x32xf32>
    %cst_9 = arith.constant 9.99999997E-7 : f32
    %17 = vector.broadcast %cst_9 : f32 to vector<8x1xf32>
    %18 = arith.addf %14, %17 : vector<8x1xf32>
    %19 = math.rsqrt %18 : vector<8x1xf32>
    %20 = vector.broadcast %19 : vector<8x1xf32> to vector<8x32xf32>
    %21 = arith.mulf %16, %20 : vector<8x32xf32>
    %22 = vector.broadcast %2 : vector<1x32xf32> to vector<8x32xf32>
    %23 = arith.mulf %21, %22 : vector<8x32xf32>
    %24 = vector.broadcast %3 : vector<1x32xf32> to vector<8x32xf32>
    %25 = arith.addf %23, %24 : vector<8x32xf32>
    %26 = arith.truncf %25 : vector<8x32xf32> to vector<8x32xbf16>
    %c0_10 = arith.constant 0 : index
    %c0_11 = arith.constant 0 : index
    %27 = vector.load %arg5[%c0_10, %c0_11] : memref<32x96xbf16, #tpu.memory_space<vmem>>, vector<32x96xbf16>
    %cst_12 = arith.constant dense<0.000000e+00> : vector<8x96xf32>
    %28 = tpu.matmul %26, %27, %cst_12 {dimension_numbers = #tpu.dot_dimension_numbers<[1], [0], [0], [1], [0, 0, 1, 1], [], []>} : vector<8x32xbf16>, vector<32x96xbf16>, vector<8x96xf32> -> vector<8x96xf32>
    %c0_13 = arith.constant 0 : index
    %c0_14 = arith.constant 0 : index
    %29 = vector.load %arg6[%c0_13, %c0_14] : memref<1x96xf32, #tpu.memory_space<vmem>>, vector<1x96xf32>
    %30 = vector.broadcast %29 : vector<1x96xf32> to vector<8x96xf32>
    %31 = arith.addf %28, %30 : vector<8x96xf32>
    %32 = vector.extract_strided_slice %31 {offsets = [0, 0], sizes = [8, 32], strides = [1, 1]} : vector<8x96xf32> to vector<8x32xf32>
    %33 = vector.extract_strided_slice %31 {offsets = [0, 32], sizes = [8, 32], strides = [1, 1]} : vector<8x96xf32> to vector<8x32xf32>
    %34 = vector.extract_strided_slice %31 {offsets = [0, 64], sizes = [8, 32], strides = [1, 1]} : vector<8x96xf32> to vector<8x32xf32>
    %c0_15 = arith.constant 0 : index
    %c0_16 = arith.constant 0 : index
    %c0_17 = arith.constant 0 : index
    %35 = vector.load %arg2[%c0_15, %c0_16, %c0_17] : memref<1x1x8xf32, #tpu.memory_space<vmem>>, vector<1x1x8xf32>
    %36 = vector.shape_cast %35 : vector<1x1x8xf32> to vector<1x8xf32>
    %37 = vector.extract_strided_slice %32 {offsets = [0, 0], sizes = [8, 8], strides = [1, 1]} : vector<8x32xf32> to vector<8x8xf32>
    %38 = arith.truncf %37 : vector<8x8xf32> to vector<8x8xbf16>
    %39 = vector.extract_strided_slice %33 {offsets = [0, 0], sizes = [8, 8], strides = [1, 1]} : vector<8x32xf32> to vector<8x8xf32>
    %40 = arith.truncf %39 : vector<8x8xf32> to vector<8x8xbf16>
    %41 = vector.extract_strided_slice %34 {offsets = [0, 0], sizes = [8, 8], strides = [1, 1]} : vector<8x32xf32> to vector<8x8xf32>
    %42 = arith.truncf %41 : vector<8x8xf32> to vector<8x8xbf16>
    %cst_18 = arith.constant dense<0.000000e+00> : vector<8x8xf32>
    %43 = tpu.matmul %38, %40, %cst_18 {dimension_numbers = #tpu.dot_dimension_numbers<[1], [1], [0], [0], [0, 0, 1, 0], [], []>} : vector<8x8xbf16>, vector<8x8xbf16>, vector<8x8xf32> -> vector<8x8xf32>
    %cst_19 = arith.constant 0.353553385 : f32
    %44 = vector.broadcast %cst_19 : f32 to vector<8x8xf32>
    %45 = arith.mulf %43, %44 : vector<8x8xf32>
    %cst_20 = arith.constant 5.000000e-01 : f32
    %46 = vector.broadcast %cst_20 : f32 to vector<1x8xf32>
    %47 = arith.cmpf ogt, %36, %46 : vector<1x8xf32>
    %cst_21 = arith.constant -1.000000e+09 : f32
    %48 = vector.shape_cast %47 : vector<1x8xi1> to vector<1x8xi1>
    %49 = vector.broadcast %48 : vector<1x8xi1> to vector<8x8xi1>
    %50 = vector.broadcast %cst_21 : f32 to vector<8x8xf32>
    %51 = arith.select %49, %45, %50 : vector<8x8xi1>, vector<8x8xf32>
    %cst_22 = arith.constant dense<0xFF800000> : vector<8xf32>
    %52 = vector.multi_reduction <maximumf>, %51, %cst_22 [1] : vector<8x8xf32> to vector<8xf32>
    %53 = vector.shape_cast %52 : vector<8xf32> to vector<8x1xf32>
    %54 = vector.broadcast %53 : vector<8x1xf32> to vector<8x8xf32>
    %55 = arith.subf %51, %54 : vector<8x8xf32>
    %56 = math.exp %55 : vector<8x8xf32>
    %cst_23 = arith.constant dense<0.000000e+00> : vector<8xf32>
    %57 = vector.multi_reduction <add>, %56, %cst_23 [1] : vector<8x8xf32> to vector<8xf32>
    %58 = vector.shape_cast %57 : vector<8xf32> to vector<8x1xf32>
    %59 = tpu.reciprocal %58 {approx = true} : vector<8x1xf32> -> vector<8x1xf32>
    %60 = vector.broadcast %59 : vector<8x1xf32> to vector<8x8xf32>
    %61 = arith.mulf %56, %60 : vector<8x8xf32>
    %62 = arith.truncf %61 : vector<8x8xf32> to vector<8x8xbf16>
    %cst_24 = arith.constant dense<0.000000e+00> : vector<8x8xf32>
    %63 = tpu.matmul %62, %42, %cst_24 {dimension_numbers = #tpu.dot_dimension_numbers<[1], [0], [0], [1], [0, 0, 1, 1], [], []>} : vector<8x8xbf16>, vector<8x8xbf16>, vector<8x8xf32> -> vector<8x8xf32>
    %64 = vector.extract_strided_slice %32 {offsets = [0, 8], sizes = [8, 8], strides = [1, 1]} : vector<8x32xf32> to vector<8x8xf32>
    %65 = arith.truncf %64 : vector<8x8xf32> to vector<8x8xbf16>
    %66 = vector.extract_strided_slice %33 {offsets = [0, 8], sizes = [8, 8], strides = [1, 1]} : vector<8x32xf32> to vector<8x8xf32>
    %67 = arith.truncf %66 : vector<8x8xf32> to vector<8x8xbf16>
    %68 = vector.extract_strided_slice %34 {offsets = [0, 8], sizes = [8, 8], strides = [1, 1]} : vector<8x32xf32> to vector<8x8xf32>
    %69 = arith.truncf %68 : vector<8x8xf32> to vector<8x8xbf16>
    %cst_25 = arith.constant dense<0.000000e+00> : vector<8x8xf32>
    %70 = tpu.matmul %65, %67, %cst_25 {dimension_numbers = #tpu.dot_dimension_numbers<[1], [1], [0], [0], [0, 0, 1, 0], [], []>} : vector<8x8xbf16>, vector<8x8xbf16>, vector<8x8xf32> -> vector<8x8xf32>
    %cst_26 = arith.constant 0.353553385 : f32
    %71 = vector.broadcast %cst_26 : f32 to vector<8x8xf32>
    %72 = arith.mulf %70, %71 : vector<8x8xf32>
    %cst_27 = arith.constant 5.000000e-01 : f32
    %73 = vector.broadcast %cst_27 : f32 to vector<1x8xf32>
    %74 = arith.cmpf ogt, %36, %73 : vector<1x8xf32>
    %cst_28 = arith.constant -1.000000e+09 : f32
    %75 = vector.shape_cast %74 : vector<1x8xi1> to vector<1x8xi1>
    %76 = vector.broadcast %75 : vector<1x8xi1> to vector<8x8xi1>
    %77 = vector.broadcast %cst_28 : f32 to vector<8x8xf32>
    %78 = arith.select %76, %72, %77 : vector<8x8xi1>, vector<8x8xf32>
    %cst_29 = arith.constant dense<0xFF800000> : vector<8xf32>
    %79 = vector.multi_reduction <maximumf>, %78, %cst_29 [1] : vector<8x8xf32> to vector<8xf32>
    %80 = vector.shape_cast %79 : vector<8xf32> to vector<8x1xf32>
    %81 = vector.broadcast %80 : vector<8x1xf32> to vector<8x8xf32>
    %82 = arith.subf %78, %81 : vector<8x8xf32>
    %83 = math.exp %82 : vector<8x8xf32>
    %cst_30 = arith.constant dense<0.000000e+00> : vector<8xf32>
    %84 = vector.multi_reduction <add>, %83, %cst_30 [1] : vector<8x8xf32> to vector<8xf32>
    %85 = vector.shape_cast %84 : vector<8xf32> to vector<8x1xf32>
    %86 = tpu.reciprocal %85 {approx = true} : vector<8x1xf32> -> vector<8x1xf32>
    %87 = vector.broadcast %86 : vector<8x1xf32> to vector<8x8xf32>
    %88 = arith.mulf %83, %87 : vector<8x8xf32>
    %89 = arith.truncf %88 : vector<8x8xf32> to vector<8x8xbf16>
    %cst_31 = arith.constant dense<0.000000e+00> : vector<8x8xf32>
    %90 = tpu.matmul %89, %69, %cst_31 {dimension_numbers = #tpu.dot_dimension_numbers<[1], [0], [0], [1], [0, 0, 1, 1], [], []>} : vector<8x8xbf16>, vector<8x8xbf16>, vector<8x8xf32> -> vector<8x8xf32>
    %91 = vector.extract_strided_slice %32 {offsets = [0, 16], sizes = [8, 8], strides = [1, 1]} : vector<8x32xf32> to vector<8x8xf32>
    %92 = arith.truncf %91 : vector<8x8xf32> to vector<8x8xbf16>
    %93 = vector.extract_strided_slice %33 {offsets = [0, 16], sizes = [8, 8], strides = [1, 1]} : vector<8x32xf32> to vector<8x8xf32>
    %94 = arith.truncf %93 : vector<8x8xf32> to vector<8x8xbf16>
    %95 = vector.extract_strided_slice %34 {offsets = [0, 16], sizes = [8, 8], strides = [1, 1]} : vector<8x32xf32> to vector<8x8xf32>
    %96 = arith.truncf %95 : vector<8x8xf32> to vector<8x8xbf16>
    %cst_32 = arith.constant dense<0.000000e+00> : vector<8x8xf32>
    %97 = tpu.matmul %92, %94, %cst_32 {dimension_numbers = #tpu.dot_dimension_numbers<[1], [1], [0], [0], [0, 0, 1, 0], [], []>} : vector<8x8xbf16>, vector<8x8xbf16>, vector<8x8xf32> -> vector<8x8xf32>
    %cst_33 = arith.constant 0.353553385 : f32
    %98 = vector.broadcast %cst_33 : f32 to vector<8x8xf32>
    %99 = arith.mulf %97, %98 : vector<8x8xf32>
    %cst_34 = arith.constant 5.000000e-01 : f32
    %100 = vector.broadcast %cst_34 : f32 to vector<1x8xf32>
    %101 = arith.cmpf ogt, %36, %100 : vector<1x8xf32>
    %cst_35 = arith.constant -1.000000e+09 : f32
    %102 = vector.shape_cast %101 : vector<1x8xi1> to vector<1x8xi1>
    %103 = vector.broadcast %102 : vector<1x8xi1> to vector<8x8xi1>
    %104 = vector.broadcast %cst_35 : f32 to vector<8x8xf32>
    %105 = arith.select %103, %99, %104 : vector<8x8xi1>, vector<8x8xf32>
    %cst_36 = arith.constant dense<0xFF800000> : vector<8xf32>
    %106 = vector.multi_reduction <maximumf>, %105, %cst_36 [1] : vector<8x8xf32> to vector<8xf32>
    %107 = vector.shape_cast %106 : vector<8xf32> to vector<8x1xf32>
    %108 = vector.broadcast %107 : vector<8x1xf32> to vector<8x8xf32>
    %109 = arith.subf %105, %108 : vector<8x8xf32>
    %110 = math.exp %109 : vector<8x8xf32>
    %cst_37 = arith.constant dense<0.000000e+00> : vector<8xf32>
    %111 = vector.multi_reduction <add>, %110, %cst_37 [1] : vector<8x8xf32> to vector<8xf32>
    %112 = vector.shape_cast %111 : vector<8xf32> to vector<8x1xf32>
    %113 = tpu.reciprocal %112 {approx = true} : vector<8x1xf32> -> vector<8x1xf32>
    %114 = vector.broadcast %113 : vector<8x1xf32> to vector<8x8xf32>
    %115 = arith.mulf %110, %114 : vector<8x8xf32>
    %116 = arith.truncf %115 : vector<8x8xf32> to vector<8x8xbf16>
    %cst_38 = arith.constant dense<0.000000e+00> : vector<8x8xf32>
    %117 = tpu.matmul %116, %96, %cst_38 {dimension_numbers = #tpu.dot_dimension_numbers<[1], [0], [0], [1], [0, 0, 1, 1], [], []>} : vector<8x8xbf16>, vector<8x8xbf16>, vector<8x8xf32> -> vector<8x8xf32>
    %118 = vector.extract_strided_slice %32 {offsets = [0, 24], sizes = [8, 8], strides = [1, 1]} : vector<8x32xf32> to vector<8x8xf32>
    %119 = arith.truncf %118 : vector<8x8xf32> to vector<8x8xbf16>
    %120 = vector.extract_strided_slice %33 {offsets = [0, 24], sizes = [8, 8], strides = [1, 1]} : vector<8x32xf32> to vector<8x8xf32>
    %121 = arith.truncf %120 : vector<8x8xf32> to vector<8x8xbf16>
    %122 = vector.extract_strided_slice %34 {offsets = [0, 24], sizes = [8, 8], strides = [1, 1]} : vector<8x32xf32> to vector<8x8xf32>
    %123 = arith.truncf %122 : vector<8x8xf32> to vector<8x8xbf16>
    %cst_39 = arith.constant dense<0.000000e+00> : vector<8x8xf32>
    %124 = tpu.matmul %119, %121, %cst_39 {dimension_numbers = #tpu.dot_dimension_numbers<[1], [1], [0], [0], [0, 0, 1, 0], [], []>} : vector<8x8xbf16>, vector<8x8xbf16>, vector<8x8xf32> -> vector<8x8xf32>
    %cst_40 = arith.constant 0.353553385 : f32
    %125 = vector.broadcast %cst_40 : f32 to vector<8x8xf32>
    %126 = arith.mulf %124, %125 : vector<8x8xf32>
    %cst_41 = arith.constant 5.000000e-01 : f32
    %127 = vector.broadcast %cst_41 : f32 to vector<1x8xf32>
    %128 = arith.cmpf ogt, %36, %127 : vector<1x8xf32>
    %cst_42 = arith.constant -1.000000e+09 : f32
    %129 = vector.shape_cast %128 : vector<1x8xi1> to vector<1x8xi1>
    %130 = vector.broadcast %129 : vector<1x8xi1> to vector<8x8xi1>
    %131 = vector.broadcast %cst_42 : f32 to vector<8x8xf32>
    %132 = arith.select %130, %126, %131 : vector<8x8xi1>, vector<8x8xf32>
    %cst_43 = arith.constant dense<0xFF800000> : vector<8xf32>
    %133 = vector.multi_reduction <maximumf>, %132, %cst_43 [1] : vector<8x8xf32> to vector<8xf32>
    %134 = vector.shape_cast %133 : vector<8xf32> to vector<8x1xf32>
    %135 = vector.broadcast %134 : vector<8x1xf32> to vector<8x8xf32>
    %136 = arith.subf %132, %135 : vector<8x8xf32>
    %137 = math.exp %136 : vector<8x8xf32>
    %cst_44 = arith.constant dense<0.000000e+00> : vector<8xf32>
    %138 = vector.multi_reduction <add>, %137, %cst_44 [1] : vector<8x8xf32> to vector<8xf32>
    %139 = vector.shape_cast %138 : vector<8xf32> to vector<8x1xf32>
    %140 = tpu.reciprocal %139 {approx = true} : vector<8x1xf32> -> vector<8x1xf32>
    %141 = vector.broadcast %140 : vector<8x1xf32> to vector<8x8xf32>
    %142 = arith.mulf %137, %141 : vector<8x8xf32>
    %143 = arith.truncf %142 : vector<8x8xf32> to vector<8x8xbf16>
    %cst_45 = arith.constant dense<0.000000e+00> : vector<8x8xf32>
    %144 = tpu.matmul %143, %123, %cst_45 {dimension_numbers = #tpu.dot_dimension_numbers<[1], [0], [0], [1], [0, 0, 1, 1], [], []>} : vector<8x8xbf16>, vector<8x8xbf16>, vector<8x8xf32> -> vector<8x8xf32>
    %145 = tpu.concatenate %63, %90, %117, %144 in 1 : vector<8x8xf32>, vector<8x8xf32>, vector<8x8xf32>, vector<8x8xf32> -> vector<8x32xf32>
    %146 = arith.truncf %145 : vector<8x32xf32> to vector<8x32xbf16>
    %c0_46 = arith.constant 0 : index
    %c0_47 = arith.constant 0 : index
    %147 = vector.load %arg7[%c0_46, %c0_47] : memref<32x32xbf16, #tpu.memory_space<vmem>>, vector<32x32xbf16>
    %cst_48 = arith.constant dense<0.000000e+00> : vector<8x32xf32>
    %148 = tpu.matmul %146, %147, %cst_48 {dimension_numbers = #tpu.dot_dimension_numbers<[1], [0], [0], [1], [0, 0, 1, 1], [], []>} : vector<8x32xbf16>, vector<32x32xbf16>, vector<8x32xf32> -> vector<8x32xf32>
    %c0_49 = arith.constant 0 : index
    %c0_50 = arith.constant 0 : index
    %149 = vector.load %arg8[%c0_49, %c0_50] : memref<1x32xf32, #tpu.memory_space<vmem>>, vector<1x32xf32>
    %150 = vector.broadcast %149 : vector<1x32xf32> to vector<8x32xf32>
    %151 = arith.addf %148, %150 : vector<8x32xf32>
    %152 = arith.addf %1, %151 : vector<8x32xf32>
    %c0_51 = arith.constant 0 : index
    %c0_52 = arith.constant 0 : index
    %c0_53 = arith.constant 0 : index
    %153 = vector.load %arg9[%c0_51, %c0_52, %c0_53] : memref<1x8x32xf32, #tpu.memory_space<vmem>>, vector<1x8x32xf32>
    %154 = vector.shape_cast %153 : vector<1x8x32xf32> to vector<8x32xf32>
    %155 = vector.shape_cast %152 : vector<8x32xf32> to vector<1x8x32xf32>
    tpu.vector_store %arg9[%c0_51, %c0_52, %c0_53], %155 {strides = array<i32>} : memref<1x8x32xf32, #tpu.memory_space<vmem>>, vector<1x8x32xf32>,
    return
  }
  func.func @transform_0(%arg0: i32) -> (i32, i32, i32) {
    %c0_i32 = arith.constant 0 : i32
    %c0_i32_0 = arith.constant 0 : i32
    %c0_i32_1 = arith.constant 0 : i32
    return %arg0, %c0_i32, %c0_i32_0 : i32, i32, i32
  }
  func.func @transform_1(%arg0: i32) -> (i32, i32, i32) {
    %c0_i32 = arith.constant 0 : i32
    %c0_i32_0 = arith.constant 0 : i32
    %c0_i32_1 = arith.constant 0 : i32
    return %arg0, %c0_i32, %c0_i32_0 : i32, i32, i32
  }
  func.func @transform_2(%arg0: i32) -> (i32, i32) {
    %c0_i32 = arith.constant 0 : i32
    %c0_i32_0 = arith.constant 0 : i32
    %c0_i32_1 = arith.constant 0 : i32
    return %c0_i32, %c0_i32_0 : i32, i32
  }
  func.func @transform_3(%arg0: i32) -> (i32, i32) {
    %c0_i32 = arith.constant 0 : i32
    %c0_i32_0 = arith.constant 0 : i32
    %c0_i32_1 = arith.constant 0 : i32
    return %c0_i32, %c0_i32_0 : i32, i32
  }
  func.func @transform_4(%arg0: i32) -> (i32, i32) {
    %c0_i32 = arith.constant 0 : i32
    %c0_i32_0 = arith.constant 0 : i32
    %c0_i32_1 = arith.constant 0 : i32
    return %c0_i32, %c0_i32_0 : i32, i32
  }
  func.func @transform_5(%arg0: i32) -> (i32, i32) {
    %c0_i32 = arith.constant 0 : i32
    %c0_i32_0 = arith.constant 0 : i32
    %c0_i32_1 = arith.constant 0 : i32
    return %c0_i32, %c0_i32_0 : i32, i32
  }
  func.func @transform_6(%arg0: i32) -> (i32, i32) {
    %c0_i32 = arith.constant 0 : i32
    %c0_i32_0 = arith.constant 0 : i32
    %c0_i32_1 = arith.constant 0 : i32
    return %c0_i32, %c0_i32_0 : i32, i32
  }
  func.func @transform_7(%arg0: i32) -> (i32, i32) {
    %c0_i32 = arith.constant 0 : i32
    %c0_i32_0 = arith.constant 0 : i32
    %c0_i32_1 = arith.constant 0 : i32
    return %c0_i32, %c0_i32_0 : i32, i32
  }
  func.func @transform_8(%arg0: i32) -> (i32, i32, i32) {
    %c0_i32 = arith.constant 0 : i32
    %c0_i32_0 = arith.constant 0 : i32
    %c0_i32_1 = arith.constant 0 : i32
    return %arg0, %c0_i32, %c0_i32_0 : i32, i32, i32
  }
}

module attributes {stable_mosaic.version = 11 : i64} {
  func.func @_head_kernel(%arg0: i32, %arg1: memref<8x32xf32, #tpu.memory_space<vmem>>, %arg2: memref<32x128xbf16, #tpu.memory_space<vmem>>, %arg3: memref<1x128xf32, #tpu.memory_space<vmem>>, %arg4: memref<8x128xf32, #tpu.memory_space<vmem>>) attributes {dimension_semantics = [#tpu.dimension_semantics<parallel>], iteration_bounds = array<i64: 2>, scalar_prefetch = 0 : i64, scratch_operands = 0 : i64, tpu.core_type = #tpu.core_type<tc>, window_params = [{transform_indices = @transform_0, window_bounds = array<i64: 8, 32>}, {pipeline_mode = #tpu.pipeline_mode<synchronous>, transform_indices = @transform_1, window_bounds = array<i64: 32, 128>}, {pipeline_mode = #tpu.pipeline_mode<synchronous>, transform_indices = @transform_2, window_bounds = array<i64: 1, 128>}, {transform_indices = @transform_3, window_bounds = array<i64: 8, 128>}]} {
    %c0 = arith.constant 0 : index
    %c0_0 = arith.constant 0 : index
    %0 = vector.load %arg1[%c0, %c0_0] : memref<8x32xf32, #tpu.memory_space<vmem>>, vector<8x32xf32>
    %1 = arith.truncf %0 : vector<8x32xf32> to vector<8x32xbf16>
    %c0_1 = arith.constant 0 : index
    %c0_2 = arith.constant 0 : index
    %2 = vector.load %arg2[%c0_1, %c0_2] : memref<32x128xbf16, #tpu.memory_space<vmem>>, vector<32x128xbf16>
    %cst = arith.constant dense<0.000000e+00> : vector<8x128xf32>
    %3 = tpu.matmul %1, %2, %cst {dimension_numbers = #tpu.dot_dimension_numbers<[1], [0], [0], [1], [0, 0, 1, 1], [], []>} : vector<8x32xbf16>, vector<32x128xbf16>, vector<8x128xf32> -> vector<8x128xf32>
    %c0_3 = arith.constant 0 : index
    %c0_4 = arith.constant 0 : index
    %4 = vector.load %arg3[%c0_3, %c0_4] : memref<1x128xf32, #tpu.memory_space<vmem>>, vector<1x128xf32>
    %5 = vector.broadcast %4 : vector<1x128xf32> to vector<8x128xf32>
    %6 = arith.addf %3, %5 : vector<8x128xf32>
    %c0_5 = arith.constant 0 : index
    %c0_6 = arith.constant 0 : index
    %7 = vector.load %arg4[%c0_5, %c0_6] : memref<8x128xf32, #tpu.memory_space<vmem>>, vector<8x128xf32>
    tpu.vector_store %arg4[%c0_5, %c0_6], %6 {strides = array<i32>} : memref<8x128xf32, #tpu.memory_space<vmem>>, vector<8x128xf32>,
    return
  }
  func.func @transform_0(%arg0: i32) -> (i32, i32) {
    %c0_i32 = arith.constant 0 : i32
    %c0_i32_0 = arith.constant 0 : i32
    return %arg0, %c0_i32 : i32, i32
  }
  func.func @transform_1(%arg0: i32) -> (i32, i32) {
    %c0_i32 = arith.constant 0 : i32
    %c0_i32_0 = arith.constant 0 : i32
    %c0_i32_1 = arith.constant 0 : i32
    return %c0_i32, %c0_i32_0 : i32, i32
  }
  func.func @transform_2(%arg0: i32) -> (i32, i32) {
    %c0_i32 = arith.constant 0 : i32
    %c0_i32_0 = arith.constant 0 : i32
    %c0_i32_1 = arith.constant 0 : i32
    return %c0_i32, %c0_i32_0 : i32, i32
  }
  func.func @transform_3(%arg0: i32) -> (i32, i32) {
    %c0_i32 = arith.constant 0 : i32
    %c0_i32_0 = arith.constant 0 : i32
    return %arg0, %c0_i32 : i32, i32
  }
}

</mosaic_0001>

<bundles_post_ra>
// kernel: people_model_forward.9
= control target key start
LH: loop header
LB: loop body
LE: loop exit
PB: predicated region body
PF: predicated region fallthrough
CT: control target
= control target key end

     0   :  { %s356_s12 = smov 0   ;;  %s382_s0 = inlined_call_operand.vmem [shape: f32[16,32], index: 0, kind: input, shape index: {}]   ;;  %s383_s1 = inlined_call_operand.vmem [shape: bf16[32,128], index: 1, kind: input, shape index: {}]   ;;  %s384_s2 = inlined_call_operand.vmem [shape: f32[1,128], index: 2, kind: input, shape index: {}]   ;;  %s385_s3 = inlined_call_operand.vmem [shape: f32[16,128], index: 3, kind: output, shape index: {}]  }
   0x1 LB: > { %s290_s13 = sadd.s32 4294967295, %s332_s12   ;;  %p294_p0 = scmp.ge.s32.totalorder %s332_s12, 1  ;;  %s332_s12 = sphi %s356_s12, %s13_s12  }
   0x2   : > { %p136_p1 = scmp.lt.s32.totalorder %s332_s12, 3 }
   0x4   : > { %p137_p2 = pnand %p294_p0, %p136_p1 }
   0x5   : > { %v324_v0 = vld [vmem:[%s383_s1] sm:$0xff] (!%p137_p2)   ;;  %v334_v1 = vmov (!%p137_p2), 0.0   ;;  %v325_v2 = vld [vmem:[%s383_s1 + $0x8] sm:$0xff] (!%p137_p2)   ;;  %vm335_vm0 = vmmov (!%p137_p2), 0   ;;  %p158_p3 = scmp.lt.s32.totalorder (!%p137_p2), %s290_s13, 1  ;;  %vm192_vm1 = vcmask (!%p137_p2), 261120  }
   0x6   : > { %140 = sbr.rel (%p137_p2) target bundleno = 234 (0xea), region = 32  ;;  %306 = vmatprep.subr.bf16.mxu0 (!%p137_p2), %v334_v1  ;;  %310 = vmatprep.mubr.msk.bf16.mxu0 (!%p137_p2), %vm335_vm0, %v334_v1  ;;  %v297_v5 = vld [vmem:[%s384_s2] ss:$0 sm:$0xff] (!%p137_p2) }
   0x7   : > { %307 = vmatpush3.bf16.msra.mxu0 (!%p137_p2), %v324_v0 }
   0x8   : > { %308 = vmatprep.subr.bf16.mxu0 (!%p137_p2), %v334_v1 }
   0xb   : > { %309 = vmatpush3.bf16.msra.mxu0 (!%p137_p2), %v325_v2 }
   0xd   : > { %s387_s13 = smov (!%p158_p3, %s290_s13), 1 }
   0xe   : > { %s295_s18 = sshll.u32 %s387_s13, 3 }
   0xf   : > { %s161_s21 = scalar_lea.vmem %s382_s0, %s295_s18  ;;  %s165_s26 = scalar_lea.vmem %s385_s3, %s295_s18 }
  0x10   : > { %v167_v3 = vld [vmem:[%s161_s21] sm:$0xff] }
  0x11   : > { %v168_v4 = vpack.c.bf16 %v167_v3, %v167_v3 }
  0x13   : > { %311 = vmatmul.mubr.msk.bf16.vlgmr.msra.gmra.mrb[0].mxu0 %vm192_vm1, %v168_v4 }
  0xe6   : > { %v230_v6 = vpop.f32.mrb[0].mxu0 }
  0xe7   : > { %v231_v7 = vadd.f32 %v297_v5, %v230_v6  ;;  %v312_v8 = vpop.f32.mrb[1].mxu0 }
  0xe8   : > { %v233_v9 = vpop.f32.mrb[2].mxu0 }
  0xe9   : > { %236 = vst [vmem:[%s165_s26] sm:$0xff] %v231_v7  ;;  %v313_v10 = vpop.f32.mrb[3].mxu0 }
  0xea PF: > { %s13_s12 = sadd.s32 1, %s332_s12  }
  0xeb   : > { %p10_p4 = scmp.ge.s32.totalorder %s13_s12, 4  }
  0xed   :  { %12 = sbr.rel (!%p10_p4) target bundleno = 1 (0x1), region = 62 }

// kernel: people_model_forward.6
= control target key start
LH: loop header
LB: loop body
LE: loop exit
PB: predicated region body
PF: predicated region fallthrough
CT: control target
= control target key end

     0   :  { %s688_s24 = smov 0   ;;  %s763_s0 = inlined_call_operand.vmem [shape: f32[16,32], index: 0, kind: input, shape index: {}]   ;;  %s764_s1 = inlined_call_operand.vmem [shape: f32[1,32], index: 1, kind: input, shape index: {}]   ;;  %s765_s2 = inlined_call_operand.vmem [shape: f32[1,32], index: 2, kind: input, shape index: {}]   ;;  %s766_s3 = inlined_call_operand.vmem [shape: bf16[32,128], index: 3, kind: input, shape index: {}]   ;;  %s767_s4 = inlined_call_operand.vmem [shape: f32[1,128], index: 4, kind: input, shape index: {}]   ;;  %s768_s5 = inlined_call_operand.vmem [shape: bf16[128,32], index: 5, kind: input, shape index: {}]   ;;  %s769_s6 = inlined_call_operand.vmem [shape: f32[1,32], index: 6, kind: input, shape index: {}]   ;;  %s770_s7 = inlined_call_operand.vmem [shape: f32[16,32], index: 7, kind: output, shape index: {}]  }
   0x1 LB: > { %s550_s25 = sadd.s32 4294967295, %s644_s24   ;;  %p554_p0 = scmp.ge.s32.totalorder %s644_s24, 1  ;;  %s644_s24 = sphi %s688_s24, %s17_s24  }
   0x2   : > { %p236_p1 = scmp.lt.s32.totalorder %s644_s24, 3 }
   0x4   : > { %p237_p2 = pnand %p554_p0, %p236_p1 }
   0x5   : > { %p266_p3 = scmp.lt.s32.totalorder (!%p237_p2), %s550_s25, 1  ;;  %vm278_vm0 = vcmask (!%p237_p2), 261120   ;;  %v624_v7 = vld [vmem:[%s766_s3] sm:$0xff] (!%p237_p2)   ;;  %v646_v8 = vmov (!%p237_p2), 0.0   ;;  %v625_v9 = vld [vmem:[%s766_s3 + $0x8] sm:$0xff] (!%p237_p2)   ;;  %vm647_vm1 = vmmov (!%p237_p2), 0  }
   0x6   : > { %240 = sbr.rel (%p237_p2) target bundleno = 790 (0x316), region = 48  ;;  %586 = vmatprep.subr.bf16.mxu0 (!%p237_p2), %v646_v8  ;;  %594 = vmatprep.subr.bf16.mxu1 (!%p237_p2), %v646_v8  ;;  %v626_v10 = vld [vmem:[%s768_s5] sm:$0xff] (!%p237_p2)   ;;  %v627_v21 = vld [vmem:[%s768_s5 + $0x8] sm:$0xff] (!%p237_p2)   ;;  %v628_v22 = vld [vmem:[%s768_s5 + $0x10] sm:$0xff] (!%p237_p2)  }
   0x7   : > { %587 = vmatpush3.bf16.msra.mxu0 (!%p237_p2), %v624_v7  ;;  %590 = vmatprep.mubr.msk.bf16.mxu0 (!%p237_p2), %vm647_vm1, %v646_v8  ;;  %v557_v15 = vld [vmem:[%s764_s1] ss:$0 sm:$0xff] (!%p237_p2)  ;;  %v629_v23 = vld [vmem:[%s768_s5 + $0x18] sm:$0xff] (!%p237_p2)   ;;  %v631_v25 = vld [vmem:[%s768_s5 + $0x28] sm:$0xff] (!%p237_p2)  }
   0x8   : > { %588 = vmatprep.subr.bf16.mxu0 (!%p237_p2), %v646_v8  ;;  %610 = vmatprep.mubr.msk.bf16.mxu1 (!%p237_p2), %vm647_vm1, %v646_v8  ;;  %v558_v17 = vld [vmem:[%s765_s2] ss:$0 sm:$0xff] (!%p237_p2)  ;;  %v632_v26 = vld [vmem:[%s768_s5 + $0x30] sm:$0xff] (!%p237_p2)   ;;  %v633_v27 = vld [vmem:[%s768_s5 + $0x38] sm:$0xff] (!%p237_p2)  }
   0x9   : > { %595 = vmatpush3.bf16.msra.mxu1 (!%p237_p2), %v626_v10  ;;  %v630_v24 = vld [vmem:[%s768_s5 + $0x20] sm:$0xff] (!%p237_p2)  }
   0xa   : > { %596 = vmatprep.subr.bf16.mxu1 (!%p237_p2), %v646_v8  ;;  %v559_v28 = vld [vmem:[%s767_s4] ss:$0 sm:$0xff] (!%p237_p2) }
   0xb   : > { %589 = vmatpush3.bf16.msra.mxu0 (!%p237_p2), %v625_v9  ;;  %v563_v44 = vld [vmem:[%s769_s6] ss:$0 sm:$0xff] (!%p237_p2) }
   0xd   : > { %s772_s25 = smov (!%p266_p3, %s550_s25), 1  ;;  %597 = vmatpush3.bf16.msra.mxu1 %v627_v21 }
   0xe   : > { %s555_s26 = sshll.u32 %s772_s25, 3  ;;  %598 = vmatprep.subr.bf16.mxu1 %v646_v8 }
   0xf   : > { %s269_s29 = scalar_lea.vmem %s763_s0, %s555_s26  ;;  %s273_s17 = scalar_lea.vmem %s770_s7, %s555_s26 }
  0x10   : > { %v704_v0 = vld [vmem:[%s269_s29] sm:$0xff] }
  0x11   : > { %v279_v1 = vsel %vm278_vm0, %v704_v0, 0.0  ;;  %599 = vmatpush3.bf16.msra.mxu1 %v628_v22 }
  0x12   : > { %280 = vadd.xlane.f32.xlu0 %v279_v1  ;;  %600 = vmatprep.subr.bf16.mxu1 %v646_v8 }
  0x15   : > { %601 = vmatpush3.bf16.msra.mxu1 %v629_v23 }
  0x16   : > { %602 = vmatprep.subr.bf16.mxu1 %v646_v8 }
  0x19   : > { %603 = vmatpush3.bf16.msra.mxu1 %v630_v24 }
  0x1a   : > { %604 = vmatprep.subr.bf16.mxu1 %v646_v8 }
  0x1d   : > { %605 = vmatpush3.bf16.msra.mxu1 %v631_v25 }
  0x1e   : > { %606 = vmatprep.subr.bf16.mxu1 %v646_v8 }
  0x21   : > { %607 = vmatpush3.bf16.msra.mxu1 %v632_v26 }
  0x22   : > { %608 = vmatprep.subr.bf16.mxu1 %v646_v8 }
  0x25   : > { %609 = vmatpush3.bf16.msra.mxu1 %v633_v27 }
  0x9f   : > { %v281_v2 = vpop.xlane.xlu0 %280 }
  0xa0   : > { %v283_v3 = vmul.f32 0.03125, %v281_v2 }
  0xa2   : > { %v284_v4 = vsub.f32 %v704_v0, %v283_v3 }
  0xa4   : > { %v285_v5 = vmul.f32 %v284_v4, %v284_v4 }
  0xa6   : > { %v286_v6 = vsel %vm278_vm0, %v285_v5, 0.0 }
  0xa7   : > { %287 = vadd.xlane.f32.xlu0 %v286_v6 }
 0x134   : > { %v288_v11 = vpop.xlane.xlu0 %287 }
 0x135   : > { %v289_v12 = vmul.f32 0.03125, %v288_v11 }
 0x137   : > { %v290_v13 = vadd.f32 1e-06, %v289_v12 }
 0x139   : > { %634 = vrsqrt.f32 %v290_v13 }
 0x143   : > { %v635_v14 = vpop.eup %634 }
 0x144   : > { %v292_v16 = vmul.f32 %v635_v14, %v284_v4 }
 0x146   : > { %v299_v18 = vmul.f32 %v557_v15, %v292_v16 }
 0x148   : > { %v306_v19 = vadd.f32 %v558_v17, %v299_v18 }
 0x14a   : > { %v307_v20 = vpack.c.bf16 %v306_v19, %v306_v19 }
 0x14c   : > { %591 = vmatmul.mubr.msk.bf16.vlgmr.msra.gmra.mrb[0].mxu0 %vm278_vm0, %v307_v20 }
 0x21f   : > { %v368_v29 = vpop.f32.mrb[0].mxu0 }
 0x220   : > { %v369_v30 = vadd.f32 %v559_v28, %v368_v29  ;;  %v592_v31 = vpop.f32.mrb[1].mxu0 }
 0x221   : > { %v371_v32 = vpop.f32.mrb[2].mxu0 }
 0x222   : > { %v375_v33 = vmul.f32 0.044715, %v369_v30  ;;  %v593_v34 = vpop.f32.mrb[3].mxu0  ;;  %v374_v40 = vmul.f32 0.5, %v369_v30 }
 0x224   : > { %v376_v35 = vmul.f32 %v375_v33, %v369_v30 }
 0x226   : > { %v377_v36 = vmul.f32 %v376_v35, %v369_v30 }
 0x228   : > { %v378_v37 = vadd.f32 %v377_v36, %v369_v30 }
 0x22a   : > { %v379_v38 = vmul.f32 0.7978846, %v378_v37 }
 0x22c   : > { %636 = vtanh.f32 %v379_v38 }
 0x236   : > { %v637_v39 = vpop.eup %636 }
 0x237   : > { %v381_v41 = vadd.f32 1.0, %v637_v39 }
 0x239   : > { %v382_v42 = vmul.f32 %v381_v41, %v374_v40 }
 0x23b   : > { %v383_v43 = vpack.c.bf16 %v382_v42, %v382_v42 }
 0x23d   : > { %611 = vmatmul.mubr.bf16.vlgmr.msra.gmra.mrb[0].mxu1 %v383_v43 }
 0x310   : > { %v489_v45 = vpop.f32.mrb[0].mxu1 }
 0x311   : > { %v490_v46 = vadd.f32 %v563_v44, %v489_v45  ;;  %v612_v47 = vpop.f32.mrb[1].mxu1 }
 0x312   : > { %v492_v48 = vpop.f32.mrb[2].mxu1 }
 0x313   : > { %v495_v49 = vadd.f32 %v490_v46, %v704_v0  ;;  %v613_v50 = vpop.f32.mrb[3].mxu1 }
 0x315   : > { %496 = vst.msk [vmem:[%s273_s17] sm:$0xff] %vm278_vm0, %v495_v49 }
 0x316 PF: > { %s17_s24 = sadd.s32 1, %s644_s24  }
 0x317   : > { %p14_p4 = scmp.ge.s32.totalorder %s17_s24, 4  }
 0x319   :  { %16 = sbr.rel (!%p14_p4) target bundleno = 1 (0x1), region = 78 }

// kernel: people_model_forward.5
= control target key start
LH: loop header
LB: loop body
LE: loop exit
PB: predicated region body
PF: predicated region fallthrough
CT: control target
= control target key end

     0   :  { %s1251_s27 = smov 0   ;;  %s1388_s0 = inlined_call_operand.vmem [shape: f32[2,8,32], index: 0, kind: input, shape index: {}]   ;;  %s1389_s1 = inlined_call_operand.vmem [shape: f32[2,1,8], index: 1, kind: input, shape index: {}]   ;;  %s1390_s2 = inlined_call_operand.vmem [shape: f32[1,32], index: 2, kind: input, shape index: {}]   ;;  %s1391_s3 = inlined_call_operand.vmem [shape: f32[1,32], index: 3, kind: input, shape index: {}]   ;;  %s1392_s4 = inlined_call_operand.vmem [shape: bf16[32,96], index: 4, kind: input, shape index: {}]   ;;  %s1393_s5 = inlined_call_operand.vmem [shape: f32[1,96], index: 5, kind: input, shape index: {}]   ;;  %s1394_s6 = inlined_call_operand.vmem [shape: bf16[32,32], index: 6, kind: input, shape index: {}]   ;;  %s1395_s7 = inlined_call_operand.vmem [shape: f32[1,32], index: 7, kind: input, shape index: {}]   ;;  %s1396_s8 = inlined_call_operand.vmem [shape: f32[2,8,32], index: 8, kind: output, shape index: {}]  }
   0x1 LB: > { %s1021_s28 = sadd.s32 4294967295, %s1187_s27   ;;  %p1025_p0 = scmp.ge.s32.totalorder %s1187_s27, 1  ;;  %s1187_s27 = sphi %s1251_s27, %s18_s27  }
   0x2   : > { %p269_p1 = scmp.lt.s32.totalorder %s1187_s27, 3 }
   0x4   : > { %p270_p2 = pnand %p1025_p0, %p269_p1 }
   0x5   : > { %p304_p3 = scmp.lt.s32.totalorder (!%p270_p2), %s1021_s28, 1  ;;  %vm319_vm0 = vcmask (!%p270_p2), 261120   ;;  %v1159_v7 = vld [vmem:[%s1392_s4] sm:$0xff] (!%p270_p2)   ;;  %v1189_v8 = vmov (!%p270_p2), 0.0   ;;  %vm1190_vm1 = vmmov (!%p270_p2), 0   ;;  %v1160_v9 = vld [vmem:[%s1392_s4 + $0x8] sm:$0xff] (!%p270_p2)   ;;  %v470_v38 = vlaneseq (!%p270_p2) }
   0x6   : > { %273 = sbr.rel (%p270_p2) target bundleno = 1810 (0x712), region = 52  ;;  %1070 = vmatprep.subr.bf16.mxu0 (!%p270_p2), %v1189_v8  ;;  %1074 = vmatprep.mubr.msk.bf16.mxu0 (!%p270_p2), %vm1190_vm1, %v1189_v8  ;;  %v1028_v14 = vld [vmem:[%s1390_s2] ss:$0 sm:$0xff] (!%p270_p2)  ;;  %s1191_s21 = smov (!%p270_p2), 120   ;;  %vm420_vm2 = vcmask (!%p270_p2), 64512   ;;  %v1198_v42 = vmov (!%p270_p2), 0  }
   0x7   : > { %1071 = vmatpush3.bf16.msra.mxu0 (!%p270_p2), %v1159_v7  ;;  %1078 = vmatprep.subr.bf16.mxu1 (!%p270_p2), %v1189_v8  ;;  %v1029_v16 = vld [vmem:[%s1391_s3] ss:$0 sm:$0xff] (!%p270_p2)  ;;  %s1192_s22 = smov (!%p270_p2), 96   ;;  %s1193_s23 = smov (!%p270_p2), 88   ;;  %v471_v40 = vshrl.u32 (!%p270_p2), %v470_v38, 7  ;;  %vm493_vm5 = vcmask (!%p270_p2), 1043456  }
   0x8   : > { %1072 = vmatprep.subr.bf16.mxu0 (!%p270_p2), %v1189_v8  ;;  %1080 = vmatprep.mubr.msk.bf16.mxu1 (!%p270_p2), %vm1190_vm1, %v1189_v8  ;;  %v1030_v20 = vld [vmem:[%s1393_s5] ss:$0 sm:$0xff] (!%p270_p2)  ;;  %s1194_s24 = smov (!%p270_p2), 80   ;;  %s1195_s25 = smov (!%p270_p2), 112   ;;  %vm886_vm6 = vcmask (!%p270_p2), 130048   ;;  %vm888_vm7 = vcmask (!%p270_p2), 195584  }
   0x9   : > { %s1196_s26 = smov (!%p270_p2), 72   ;;  %s1197_s30 = smov (!%p270_p2), 104   ;;  %v472_v41 = vsub.s32 (!%p270_p2), 0, %v471_v40 }
   0xa   : > { %s1199_s12 = smov (!%p270_p2), 64   ;;  %s1200_s13 = smov (!%p270_p2), 56  }
   0xb   : > { %1073 = vmatpush3.bf16.msra.mxu0 (!%p270_p2), %v1160_v9  ;;  %s1201_s14 = smov (!%p270_p2), 48   ;;  %s1202_s15 = smov (!%p270_p2), 40  }
   0xc   : > { %1084 = vmatprep.subr.bf16.mxu0 (!%p270_p2), %v1189_v8  ;;  %s1203_s16 = smov (!%p270_p2), 8  }
   0xd   : > { %s1398_s28 = smov (!%p304_p3, %s1021_s28), 1 }
   0xe   : > { %s1026_s29 = sshll.u32 %s1398_s28, 3  ;;  %s310_s11 = scalar_lea.vmem %s1389_s1, %s1398_s28 }
   0xf   : > { %s307_s10 = scalar_lea.vmem %s1388_s0, %s1026_s29  ;;  %v415_v39 = vld [vmem:[%s310_s11] sm:$0x1] }
  0x10   : > { %v1267_v0 = vld [vmem:[%s307_s10] sm:$0xff]  ;;  %vm468_vm3 = vcmp.gt.f32.partialorder %v415_v39, 0.5 }
  0x11   : > { %v320_v1 = vsel %vm319_vm0, %v1267_v0, 0.0  ;;  %v469_v43 = vsel %vm468_vm3, 1, %v1198_v42 }
  0x12   : > { %321 = vadd.xlane.f32.xlu0 %v320_v1  ;;  %v473_v44 = vrot.slane %v469_v43, %v472_v41 }
  0x14   : > { %vm474_vm4 = vcmp.eq.s32.totalorder %v473_v44, 1 }
  0x9f   : > { %v322_v2 = vpop.xlane.xlu0 %321 }
  0xa0   : > { %v324_v3 = vmul.f32 0.03125, %v322_v2 }
  0xa2   : > { %v325_v4 = vsub.f32 %v1267_v0, %v324_v3 }
  0xa4   : > { %v326_v5 = vmul.f32 %v325_v4, %v325_v4 }
  0xa6   : > { %v327_v6 = vsel %vm319_vm0, %v326_v5, 0.0 }
  0xa7   : > { %328 = vadd.xlane.f32.xlu0 %v327_v6 }
 0x134   : > { %v329_v10 = vpop.xlane.xlu0 %328 }
 0x135   : > { %v330_v11 = vmul.f32 0.03125, %v329_v10 }
 0x137   : > { %v331_v12 = vadd.f32 1e-06, %v330_v11 }
 0x139   : > { %1163 = vrsqrt.f32 %v331_v12 }
 0x143   : > { %v1164_v13 = vpop.eup %1163 }
 0x144   : > { %v333_v15 = vmul.f32 %v1164_v13, %v325_v4 }
 0x146   : > { %v340_v17 = vmul.f32 %v1028_v14, %v333_v15 }
 0x148   : > { %v347_v18 = vadd.f32 %v1029_v16, %v340_v17 }
 0x14a   : > { %v348_v19 = vpack.c.bf16 %v347_v18, %v347_v18 }
 0x14c   : > { %1075 = vmatmul.mubr.msk.bf16.vlgmr.msra.gmra.mrb[0].mxu0 %vm319_vm0, %v348_v19 }
 0x14d   : > { %1086 = vmatprep.mubr.msk.bf16.mxu0 %vm1190_vm1, %v1189_v8 }
 0x21f   : > { %v409_v21 = vpop.f32.mrb[0].mxu0 }
 0x220   : > { %v410_v22 = vadd.f32 %v1030_v20, %v409_v21  ;;  %v1076_v23 = vpop.f32.mrb[1].mxu0 }
 0x221   : > { %v412_v24 = vpop.f32.mrb[2].mxu0 }
 0x222   : > { %v1299_v25 = vpack.c.bf16 %v410_v22, %v410_v22  ;;  %v1077_v26 = vpop.f32.mrb[3].mxu0 }
 0x224   : > { %537 = vrot.lane.b32.xlu0 %v1299_v25, %s1191_s21  ;;  %418 = vrot.lane.b32.xlu1 %v1299_v25, %s1192_s22  ;;  %s1204_s21 = smov 16   ;;  %s1205_s22 = smov 24  }
 0x228   : > { %539 = vrot.lane.b32.xlu1 %v1299_v25, %s1193_s23 }
 0x22c   : > { %651 = vrot.lane.b32.xlu1 %v1299_v25, %s1194_s24 }
 0x230   : > { %649 = vrot.lane.b32.xlu1 %v1299_v25, %s1195_s25 }
 0x234   : > { %763 = vrot.lane.b32.xlu1 %v1299_v25, %s1196_s26 }
 0x238   : > { %761 = vrot.lane.b32.xlu1 %v1299_v25, %s1197_s30  ;;  %s314_s30 = scalar_lea.vmem %s1396_s8, %s1026_s29 }
 0x296   : > { %v419_v27 = vpop.permute.xlu1 %418  ;;  %v538_v32 = vpop.permute.xlu0 %537 }
 0x297   : > { %v425_v28 = vsel %vm420_vm2, %v419_v27, 0 }
 0x298   : > { %1079 = vmatpush3.bf16.xpose.msra.mxu1 %v425_v28 }
 0x299   : > { %1090 = vmatprep.subr.bf16.mxu1 %v1189_v8 }
 0x29a   : > { %v540_v29 = vpop.permute.xlu1 %539 }
 0x29b   : > { %v545_v30 = vsel %vm420_vm2, %v540_v29, 0 }
 0x29e   : > { %v652_v31 = vpop.permute.xlu1 %651 }
 0x29f   : > { %1081 = vmatmul.mubr.msk.bf16.vlgmr.msra.gmra.mrb[0].mxu1 %vm420_vm2, %v1299_v25  ;;  %v657_v34 = vsel %vm420_vm2, %v652_v31, 0 }
 0x2a0   : > { %1091 = vmatpush3.bf16.xpose.msra.mxu1 %v545_v30  ;;  %1092 = vmatprep.mubr.msk.bf16.mxu1 %vm1190_vm1, %v1189_v8 }
 0x2a1   : > { %1102 = vmatprep.subr.bf16.mxu1 %v1189_v8 }
 0x2a2   : > { %v650_v33 = vpop.permute.xlu1 %649 }
 0x2a6   : > { %v764_v35 = vpop.permute.xlu1 %763 }
 0x2a7   : > { %1093 = vmatmul.mubr.msk.bf16.vlgmr.msra.gmra.mrb[4].mxu1 %vm420_vm2, %v538_v32  ;;  %v769_v36 = vsel %vm420_vm2, %v764_v35, 0 }
 0x2a8   : > { %1103 = vmatpush3.bf16.xpose.msra.mxu1 %v657_v34  ;;  %1104 = vmatprep.mubr.msk.bf16.mxu1 %vm1190_vm1, %v1189_v8 }
 0x2a9   : > { %1114 = vmatprep.subr.bf16.mxu1 %v1189_v8 }
 0x2aa   : > { %v762_v37 = vpop.permute.xlu1 %761 }
 0x2af   : > { %1105 = vmatmul.mubr.msk.bf16.vlgmr.msra.gmra.mrb[8].mxu1 %vm420_vm2, %v650_v33 }
 0x2b0   : > { %1115 = vmatpush3.bf16.xpose.msra.mxu1 %v769_v36  ;;  %1116 = vmatprep.mubr.msk.bf16.mxu1 %vm1190_vm1, %v1189_v8 }
 0x2b1   : > { %1126 = vmatprep.subr.bf16.mxu1 %v1189_v8 }
 0x2b7   : > { %1117 = vmatmul.mubr.msk.bf16.vlgmr.msra.gmra.mrb[12].mxu1 %vm420_vm2, %v762_v37 }
 0x2b8   : > { %1130 = vmatprep.mubr.msk.bf16.mxu1 %vm1190_vm1, %v1189_v8 }
 0x372   : > { %v461_v45 = vpop.f32.mrb[0].mxu1 }
 0x373   : > { %v467_v46 = vmul.f32 0.35355338, %v461_v45  ;;  %v1082_v47 = vpop.f32.mrb[1].mxu1 }
 0x374   : > { %v464_v48 = vpop.f32.mrb[2].mxu1 }
 0x375   : > { %v1083_v49 = vpop.f32.mrb[3].mxu1  ;;  %v475_v50 = vsel %vm474_vm4, %v467_v46, -1e+09 }
 0x376   : > { %v476_v51 = vsel %vm420_vm2, %v475_v50, -inf }
 0x377   : > { %477 = vmax.xlane.f32.xlu1 %v476_v51 }
 0x37a   : > { %v581_v52 = vpop.f32.mrb[4].mxu1 }
 0x37b   : > { %v587_v53 = vmul.f32 0.35355338, %v581_v52  ;;  %v1094_v54 = vpop.f32.mrb[5].mxu1 }
 0x37c   : > { %v584_v55 = vpop.f32.mrb[6].mxu1 }
 0x37d   : > { %v1095_v56 = vpop.f32.mrb[7].mxu1  ;;  %v588_v57 = vsel %vm474_vm4, %v587_v53, -1e+09 }
 0x37e   : > { %v589_v58 = vsel %vm420_vm2, %v588_v57, -inf }
 0x37f   : > { %590 = vmax.xlane.f32.xlu0 %v589_v58 }
 0x382   : > { %v693_v59 = vpop.f32.mrb[8].mxu1 }
 0x383   : > { %v699_v60 = vmul.f32 0.35355338, %v693_v59  ;;  %v1106_v61 = vpop.f32.mrb[9].mxu1 }
 0x384   : > { %v696_v62 = vpop.f32.mrb[10].mxu1 }
 0x385   : > { %v1107_v63 = vpop.f32.mrb[11].mxu1  ;;  %v700_v1 = vsel %vm474_vm4, %v699_v60, -1e+09 }
 0x386   : > { %v701_v2 = vsel %vm420_vm2, %v700_v1, -inf  ;;  %v1161_v63 = vld [vmem:[%s1394_s6] sm:$0xff]  }
 0x387   : > { %702 = vmax.xlane.f32.xlu1 %v701_v2  ;;  %1127 = vmatpush3.bf16.msra.mxu1 %v1161_v63 }
 0x388   : > { %1128 = vmatprep.subr.bf16.mxu1 %v1189_v8 }
 0x38a   : > { %v805_v3 = vpop.f32.mrb[12].mxu1 }
 0x38b   : > { %v811_v4 = vmul.f32 0.35355338, %v805_v3  ;;  %v1118_v5 = vpop.f32.mrb[13].mxu1 }
 0x38c   : > { %v808_v6 = vpop.f32.mrb[14].mxu1 }
 0x38d   : > { %v1119_v7 = vpop.f32.mrb[15].mxu1  ;;  %v812_v9 = vsel %vm474_vm4, %v811_v4, -1e+09 }
 0x38e   : > { %v813_v10 = vsel %vm420_vm2, %v812_v9, -inf }
 0x38f   : > { %814 = vmax.xlane.f32.xlu0 %v813_v10 }
 0x404   : > { %v478_v11 = vpop.xlane.xlu1 %477 }
 0x405   : > { %v479_v12 = vsub.f32 %v475_v50, %v478_v11 }
 0x407   : > { %v480_v13 = vmul.f32 1.442695, %v479_v12 }
 0x409   : > { %1165 = vpow2.f32 %v480_v13 }
 0x40c   : > { %v591_v14 = vpop.xlane.xlu0 %590 }
 0x40d   : > { %v592_v15 = vsub.f32 %v588_v57, %v591_v14 }
 0x40f   : > { %v593_v16 = vmul.f32 1.442695, %v592_v15 }
 0x411   : > { %1167 = vpow2.f32 %v593_v16 }
 0x413   : > { %v1166_v17 = vpop.eup %1165 }
 0x414   : > { %v482_v18 = vsel %vm420_vm2, %v1166_v17, 0.0  ;;  %v703_v27 = vpop.xlane.xlu1 %702 }
 0x415   : > { %483 = vadd.xlane.f32.xlu1 %v482_v18  ;;  %v704_v28 = vsub.f32 %v700_v1, %v703_v27  ;;  %v1162_v1 = vld [vmem:[%s1394_s6 + $0x8] sm:$0xff]  }
 0x416   : > { %1129 = vmatpush3.bf16.msra.mxu1 %v1162_v1 }
 0x417   : > { %v705_v29 = vmul.f32 1.442695, %v704_v28 }
 0x41b   : > { %v1168_v19 = vpop.eup %1167 }
 0x41c   : > { %v815_v20 = vpop.xlane.xlu0 %814  ;;  %v595_v21 = vsel %vm420_vm2, %v1168_v19, 0.0 }
 0x41d   : > { %v816_v22 = vsub.f32 %v812_v9, %v815_v20  ;;  %596 = vadd.xlane.f32.xlu0 %v595_v21 }
 0x41f   : > { %v817_v23 = vmul.f32 1.442695, %v816_v22 }
 0x421   : > { %1169 = vpow2.f32 %v817_v23 }
 0x422   : > { %1171 = vpow2.f32 %v705_v29 }
 0x426   : > { %488 = vrot.lane.b32.xlu1 %v1299_v25, %s1199_s12 }
 0x42b   : > { %v1170_v24 = vpop.eup %1169 }
 0x42c   : > { %v819_v26 = vsel %vm420_vm2, %v1170_v24, 0.0  ;;  %v1172_v30 = vpop.eup %1171 }
 0x42d   : > { %820 = vadd.xlane.f32.xlu0 %v819_v26  ;;  %v707_v31 = vsel %vm420_vm2, %v1172_v30, 0.0 }
 0x443   : > { %601 = vrot.lane.b32.xlu0 %v1299_v25, %s1200_s13 }
 0x44a   : > { %708 = vadd.xlane.f32.xlu1 %v707_v31 }
 0x45b   : > { %713 = vrot.lane.b32.xlu1 %v1299_v25, %s1201_s14 }
 0x45f   : > { %825 = vrot.lane.b32.xlu1 %v1299_v25, %s1202_s15 }
 0x4a2   : > { %v484_v32 = vpop.xlane.xlu1 %483 }
 0x4a3   : > { %1173 = vrcp.f32 %v484_v32 }
 0x4a6   : > { %v489_v33 = vpop.permute.xlu1 %488 }
 0x4a7   : > { %v495_v34 = vsel %vm493_vm5, %v489_v33, 0 }
 0x4a8   : > { %1085 = vmatpush3.bf16.msra.mxu0 %v495_v34 }
 0x4a9   : > { %1096 = vmatprep.subr.bf16.mxu0 %v1189_v8 }
 0x4aa   : > { %v597_v36 = vpop.xlane.xlu0 %596 }
 0x4ab   : > { %1175 = vrcp.f32 %v597_v36 }
 0x4ad   : > { %v1174_v35 = vpop.eup %1173 }
 0x4ae   : > { %v486_v37 = vmul.f32 %v1174_v35, %v1166_v17  ;;  %v1042_v17 = vld [vmem:[%s1395_s7] ss:$0 sm:$0xff] }
 0x4b0   : > { %v487_v38 = vpack.c.bf16 %v486_v37, %v486_v37 }
 0x4b2   : > { %1087 = vmatmul.mubr.msk.bf16.vlgmr.msra.gmra.mrb[4].mxu0 %vm420_vm2, %v487_v38 }
 0x4b3   : > { %1098 = vmatprep.mubr.msk.bf16.mxu0 %vm1190_vm1, %v1189_v8 }
 0x4b5   : > { %v1176_v25 = vpop.eup %1175 }
 0x4b6   : > { %v599_v40 = vmul.f32 %v1176_v25, %v1168_v19 }
 0x4b8   : > { %v600_v43 = vpack.c.bf16 %v599_v40, %v599_v40 }
 0x4ba   : > { %v821_v39 = vpop.xlane.xlu0 %820 }
 0x4be   : > { %v602_v41 = vpop.permute.xlu0 %601 }
 0x4bf   : > { %v607_v42 = vsel %vm493_vm5, %v602_v41, 0 }
 0x4c0   : > { %1097 = vmatpush3.bf16.msra.mxu0 %v607_v42 }
 0x4c1   : > { %1108 = vmatprep.subr.bf16.mxu0 %v1189_v8 }
 0x4c3   : > { %1099 = vmatmul.mubr.msk.bf16.vlgmr.msra.gmra.mrb[8].mxu0 %vm420_vm2, %v600_v43 }
 0x4c4   : > { %1110 = vmatprep.mubr.msk.bf16.mxu0 %vm1190_vm1, %v1189_v8 }
 0x4d7   : > { %v709_v44 = vpop.xlane.xlu1 %708 }
 0x4d8   : > { %1177 = vrcp.f32 %v709_v44 }
 0x4d9   : > { %1179 = vrcp.f32 %v821_v39 }
 0x4db   : > { %v714_v45 = vpop.permute.xlu1 %713 }
 0x4dc   : > { %v719_v46 = vsel %vm493_vm5, %v714_v45, 0 }
 0x4dd   : > { %1109 = vmatpush3.bf16.msra.mxu0 %v719_v46 }
 0x4de   : > { %1120 = vmatprep.subr.bf16.mxu0 %v1189_v8 }
 0x4df   : > { %v826_v49 = vpop.permute.xlu1 %825 }
 0x4e0   : > { %v831_v52 = vsel %vm493_vm5, %v826_v49, 0 }
 0x4e2   : > { %v1178_v47 = vpop.eup %1177 }
 0x4e3   : > { %v711_v48 = vmul.f32 %v1178_v47, %v1172_v30  ;;  %v1180_v51 = vpop.eup %1179 }
 0x4e4   : > { %v823_v53 = vmul.f32 %v1180_v51, %v1170_v24 }
 0x4e5   : > { %v712_v50 = vpack.c.bf16 %v711_v48, %v711_v48 }
 0x4e6   : > { %v824_v54 = vpack.c.bf16 %v823_v53, %v823_v53 }
 0x4e7   : > { %1111 = vmatmul.mubr.msk.bf16.vlgmr.msra.gmra.mrb[12].mxu0 %vm420_vm2, %v712_v50 }
 0x4e8   : > { %1121 = vmatpush3.bf16.msra.mxu0 %v831_v52  ;;  %1122 = vmatprep.mubr.msk.bf16.mxu0 %vm1190_vm1, %v1189_v8 }
 0x4ef   : > { %1123 = vmatmul.mubr.msk.bf16.vlgmr.msra.gmra.mrb[16].mxu0 %vm420_vm2, %v824_v54 }
 0x585   : > { %v531_v55 = vpop.f32.mrb[4].mxu0 }
 0x586   : > { %v1088_v56 = vpop.f32.mrb[5].mxu0 }
 0x587   : > { %v534_v57 = vpop.f32.mrb[6].mxu0 }
 0x588   : > { %v1089_v58 = vpop.f32.mrb[7].mxu0 }
 0x596   : > { %v643_v59 = vpop.f32.mrb[8].mxu0 }
 0x597   : > { %874 = vrot.lane.b32.xlu0 %v643_v59, %s1203_s16  ;;  %v1100_v60 = vpop.f32.mrb[9].mxu0 }
 0x598   : > { %v646_v61 = vpop.f32.mrb[10].mxu0 }
 0x599   : > { %v1101_v62 = vpop.f32.mrb[11].mxu0 }
 0x5ba   : > { %v755_v2 = vpop.f32.mrb[12].mxu0 }
 0x5bb   : > { %878 = vrot.lane.b32.xlu1 %v755_v2, %s1204_s21  ;;  %v1112_v3 = vpop.f32.mrb[13].mxu0 }
 0x5bc   : > { %v758_v4 = vpop.f32.mrb[14].mxu0 }
 0x5bd   : > { %v1113_v5 = vpop.f32.mrb[15].mxu0 }
 0x5c2   : > { %v867_v6 = vpop.f32.mrb[16].mxu0 }
 0x5c3   : > { %882 = vrot.lane.b32.xlu0 %v867_v6, %s1205_s22  ;;  %v1124_v7 = vpop.f32.mrb[17].mxu0 }
 0x5c4   : > { %v870_v9 = vpop.f32.mrb[18].mxu0 }
 0x5c5   : > { %v1125_v10 = vpop.f32.mrb[19].mxu0 }
 0x609   : > { %v875_v11 = vpop.permute.xlu0 %874 }
 0x60a   : > { %v885_v8 = vsel %vm420_vm2, %v531_v55, %v875_v11 }
 0x62d   : > { %v879_v12 = vpop.permute.xlu1 %878 }
 0x62e   : > { %v887_v13 = vsel %vm886_vm6, %v885_v8, %v879_v12 }
 0x635   : > { %v883_v14 = vpop.permute.xlu0 %882 }
 0x636   : > { %v889_v15 = vsel %vm888_vm7, %v887_v13, %v883_v14 }
 0x637   : > { %v890_v16 = vpack.c.bf16 %v889_v15, %v889_v15 }
 0x639   : > { %1131 = vmatmul.mubr.msk.bf16.vlgmr.msra.gmra.mrb[16].mxu1 %vm319_vm0, %v890_v16 }
 0x70c   : > { %v951_v18 = vpop.f32.mrb[16].mxu1 }
 0x70d   : > { %v952_v19 = vadd.f32 %v1042_v17, %v951_v18  ;;  %v1132_v20 = vpop.f32.mrb[17].mxu1 }
 0x70e   : > { %v954_v21 = vpop.f32.mrb[18].mxu1 }
 0x70f   : > { %v957_v22 = vadd.f32 %v952_v19, %v1267_v0  ;;  %v1133_v23 = vpop.f32.mrb[19].mxu1 }
 0x711   : > { %958 = vst.msk [vmem:[%s314_s30] sm:$0xff] %vm319_vm0, %v957_v22 }
 0x712 PF: > { %s18_s27 = sadd.s32 1, %s1187_s27  }
 0x713   : > { %p15_p4 = scmp.ge.s32.totalorder %s18_s27, 4  }
 0x715   :  { %17 = sbr.rel (!%p15_p4) target bundleno = 1 (0x1), region = 85 }

</bundles_post_ra>
